<compile_context>
chip_gen: v7x
topology: tpu7x:2x2x1
jax: 0.10.0
libtpu: 0.0.40
codegen_flags: <defaults>
</compile_context>

<pallas_src>
import functools

import jax
import jax.numpy as jnp
from jax.experimental import pallas as pl
from jax.experimental.pallas import tpu as pltpu

BN_EPS = 0.001
LANE = 128
SUBLANE = 8


def _round_up(v, m):
    return -(-v // m) * m


def tanh_block_kernel(x_ref, w_ref, gamma_ref, beta_ref, o_ref, acc_ref, *, n_valid):
    k = pl.program_id(1)

    @pl.when(k == 0)
    def _():
        acc_ref[...] = jnp.zeros_like(acc_ref)

    # ---- Linear: y += x_k @ W_k^T (MXU).  Bias omitted: exactly cancelled by
    #      the batch-mean subtraction of training-mode BatchNorm.
    acc_ref[...] += jax.lax.dot_general(
        x_ref[...], w_ref[...],
        dimension_numbers=(((1,), (1,)), ((), ())),
        precision=jax.lax.Precision.HIGHEST,
        preferred_element_type=jnp.float32)          # (N_pad, TILE_D)

    # ---- Epilogue on the last K step: BN stats (XLU) + affine + tanh (EUP).
    @pl.when(k == pl.num_programs(1) - 1)
    def _():
        y = acc_ref[...]                              # (N_pad, TILE_D) f32
        n_pad = y.shape[0]
        inv_n = 1.0 / n_valid

        # Padded batch rows of y are exactly zero, so an unmasked sublane sum
        # gives the valid-row sum (no MXU mask-matmul needed).
        mean = jnp.sum(y, axis=0, keepdims=True) * inv_n          # (1, TILE_D)

        # Two-pass (shifted) variance for robustness; (y - mean) is nonzero on
        # padded rows, so those rows are masked out here.
        row_valid = jax.lax.broadcasted_iota(jnp.int32, (n_pad, 1), 0) < n_valid
        d = jnp.where(row_valid, y - mean, 0.0)
        var = jnp.sum(d * d, axis=0, keepdims=True) * inv_n       # biased (train mode)
        inv_std = jax.lax.rsqrt(var + BN_EPS)

        # Fold gamma into inv_std: y_bn = y * a + c (one mul + one add / elem).
        a = gamma_ref[...] * inv_std                  # (1, TILE_D)
        c = beta_ref[...] - mean * a                  # (1, TILE_D)

        o_ref[...] = jnp.tanh(y * a + c).astype(o_ref.dtype)


def _tanh_block_impl(x, weight, bias, gamma, beta):
    """x: (N, dim_in) f32; weight: (dim_out, dim_in); bias/gamma/beta: (dim_out,)."""
    # bias is mathematically cancelled by BN's batch-mean subtraction; kept in
    # the signature for API parity only.
    del bias

    n, dim_in = x.shape
    dim_out = weight.shape[0]

    # ---- Tile selection (lane/sublane dense) ----
    n_pad = _round_up(n, SUBLANE)

    # dim_out tiles: 256 fills the v6e/v7x 256-wide MXU and halves grid steps;
    # fall back to 128 when dim_out is small to avoid pure-padding work.
    tile_d = 2 * LANE if _round_up(dim_out, LANE) >= 2 * LANE else LANE
    d_pad = _round_up(dim_out, tile_d)

    # K reduction tiles: bound VMEM residency instead of keeping full K live.
    tile_k = min(512, _round_up(dim_in, LANE))
    k_pad = _round_up(dim_in, tile_k)

    # ---- Zero-pad to dense shapes (padded W/gamma/beta cols produce exact
    #      zeros, no NaNs; padded batch rows are sliced off at the end). ----
    x_p = jnp.pad(x, ((0, n_pad - n), (0, k_pad - dim_in)))
    w_p = jnp.pad(weight, ((0, d_pad - dim_out), (0, k_pad - dim_in)))
    g_p = jnp.pad(gamma, (0, d_pad - dim_out)).reshape(1, d_pad)
    b_p = jnp.pad(beta, (0, d_pad - dim_out)).reshape(1, d_pad)

    # ---- VMEM budget: explicit limit sized to the chip, with headroom. ----
    itemsize = 4
    est = itemsize * (
        2 * n_pad * tile_k        # x block, double-buffered
        + 2 * tile_d * tile_k     # W block, double-buffered
        + 2 * 2 * tile_d          # gamma + beta
        + 2 * n_pad * tile_d      # output block, double-buffered
        + n_pad * tile_d          # f32 accumulator scratch
    )
    try:
        phys_vmem = pltpu.get_tpu_info().vmem_capacity_bytes
    except Exception:  # pragma: no cover - conservative fallback (v7x per-TC)
        phys_vmem = 64 << 20
    vmem_limit = min(int(phys_vmem * 3 // 4), max(32 << 20, 2 * est))

    kernel = functools.partial(tanh_block_kernel, n_valid=n)

    out = pl.pallas_call(
        kernel,
        out_shape=jax.ShapeDtypeStruct((n_pad, d_pad), jnp.float32),
        grid_spec=pltpu.PrefetchScalarGridSpec(
            num_scalar_prefetch=0,
            grid=(d_pad // tile_d, k_pad // tile_k),          # (d tiles, k tiles)
            in_specs=[
                pl.BlockSpec((n_pad, tile_k), lambda j, k: (0, k)),   # x k-chunk
                pl.BlockSpec((tile_d, tile_k), lambda j, k: (j, k)),  # W tile
                pl.BlockSpec((1, tile_d), lambda j, k: (0, j)),       # gamma
                pl.BlockSpec((1, tile_d), lambda j, k: (0, j)),       # beta
            ],
            out_specs=pl.BlockSpec((n_pad, tile_d), lambda j, k: (0, j)),
            scratch_shapes=[pltpu.VMEM((n_pad, tile_d), jnp.float32)],
        ),
        compiler_params=pltpu.CompilerParams(
            dimension_semantics=("parallel", "arbitrary"),
            vmem_limit_bytes=vmem_limit),
    )(x_p, w_p, g_p, b_p)

    return out[:n, :dim_out]


# One jit over padding + pallas_call + slice so the layout plumbing fuses.
tanh_block = jax.jit(_tanh_block_impl)


def reference(x, weight, bias, gamma, beta):
    y = jnp.dot(x, weight.T, precision=jax.lax.Precision.HIGHEST) + bias
    mean = jnp.mean(y, axis=0, keepdims=True)
    var = jnp.mean((y - mean) ** 2, axis=0, keepdims=True)
    y = (y - mean) / jnp.sqrt(var + BN_EPS)
    y = y * gamma + beta
    return jnp.tanh(y)


if __name__ == "__main__":
    key = jax.random.PRNGKey(0)
    k_x, k_w, k_b, k_g, k_be = jax.random.split(key, 5)

    N, DIM_IN, DIM_OUT = 8, 32, 32

    x = jax.random.normal(k_x, (N, DIM_IN), dtype=jnp.float32)
    bound = 1.0 / (DIM_IN ** 0.5)
    weight = jax.random.uniform(k_w, (DIM_OUT, DIM_IN), jnp.float32, -bound, bound)
    bias = jax.random.uniform(k_b, (DIM_OUT,), jnp.float32, -bound, bound)
    gamma = 1.0 + 0.1 * jax.random.normal(k_g, (DIM_OUT,), dtype=jnp.float32)
    beta = 0.1 * jax.random.normal(k_be, (DIM_OUT,), dtype=jnp.float32)

    out = tanh_block(x, weight, bias, gamma, beta)
    out = jax.block_until_ready(out)

    ref = reference(x, weight, bias, gamma, beta)
    assert out.shape == (N, DIM_OUT)
    assert bool(jnp.all(jnp.isfinite(out)))
    assert jnp.allclose(out, ref, atol=1e-4, rtol=1e-4), "mismatch vs reference"

    print("KERNEL_OK")
</pallas_src>

<mosaic_0001>
module attributes {stable_mosaic.version = 11 : i64} {
  func.func @tanh_block_kernel(%arg0: i32, %arg1: i32, %arg2: memref<8x128xf32, #tpu.memory_space<vmem>>, %arg3: memref<128x128xf32, #tpu.memory_space<vmem>>, %arg4: memref<1x128xf32, #tpu.memory_space<vmem>>, %arg5: memref<1x128xf32, #tpu.memory_space<vmem>>, %arg6: memref<8x128xf32, #tpu.memory_space<vmem>>, %arg7: memref<8x128xf32, #tpu.memory_space<vmem>>) attributes {dimension_semantics = [#tpu.dimension_semantics<parallel>, #tpu.dimension_semantics<arbitrary>], iteration_bounds = array<i64: 1, 1>, scalar_prefetch = 0 : i64, scratch_operands = 1 : i64, tpu.core_type = #tpu.core_type<tc>, window_params = [{transform_indices = @transform_0, window_bounds = array<i64: 8, 128>}, {transform_indices = @transform_1, window_bounds = array<i64: 128, 128>}, {transform_indices = @transform_2, window_bounds = array<i64: 1, 128>}, {transform_indices = @transform_3, window_bounds = array<i64: 1, 128>}, {transform_indices = @transform_4, window_bounds = array<i64: 8, 128>}]} {
    %c0_i32 = arith.constant 0 : i32
    %0 = arith.cmpi eq, %arg1, %c0_i32 : i32
    %1 = arith.extui %0 : i1 to i32
    %c0_i32_0 = arith.constant 0 : i32
    %2 = arith.cmpi ne, %1, %c0_i32_0 : i32
    scf.if %2 {
      %cst_10 = arith.constant 0.000000e+00 : f32
      %12 = vector.broadcast %cst_10 : f32 to vector<8x128xf32>
      %c0_11 = arith.constant 0 : index
      %c0_12 = arith.constant 0 : index
      %13 = vector.load %arg7[%c0_11, %c0_12] : memref<8x128xf32, #tpu.memory_space<vmem>>, vector<8x128xf32>
      tpu.vector_store %arg7[%c0_11, %c0_12], %12 {strides = array<i32>} : memref<8x128xf32, #tpu.memory_space<vmem>>, vector<8x128xf32>,
    } else {
    }
    %c0 = arith.constant 0 : index
    %c0_1 = arith.constant 0 : index
    %3 = vector.load %arg7[%c0, %c0_1] : memref<8x128xf32, #tpu.memory_space<vmem>>, vector<8x128xf32>
    %c0_2 = arith.constant 0 : index
    %c0_3 = arith.constant 0 : index
    %4 = vector.load %arg2[%c0_2, %c0_3] : memref<8x128xf32, #tpu.memory_space<vmem>>, vector<8x128xf32>
    %c0_4 = arith.constant 0 : index
    %c0_5 = arith.constant 0 : index
    %5 = vector.load %arg3[%c0_4, %c0_5] : memref<128x128xf32, #tpu.memory_space<vmem>>, vector<128x128xf32>
    %cst = arith.constant dense<0.000000e+00> : vector<8x128xf32>
    %6 = tpu.matmul %4, %5, %cst {dimension_numbers = #tpu.dot_dimension_numbers<[1], [1], [0], [0], [0, 0, 1, 0], [], []>, precision = #tpu.contract_precision<fp32>} : vector<8x128xf32>, vector<128x128xf32>, vector<8x128xf32> -> vector<8x128xf32>
    %7 = arith.addf %3, %6 : vector<8x128xf32>
    %c0_6 = arith.constant 0 : index
    %c0_7 = arith.constant 0 : index
    %8 = vector.load %arg7[%c0_6, %c0_7] : memref<8x128xf32, #tpu.memory_space<vmem>>, vector<8x128xf32>
    tpu.vector_store %arg7[%c0_6, %c0_7], %7 {strides = array<i32>} : memref<8x128xf32, #tpu.memory_space<vmem>>, vector<8x128xf32>,
    %c0_i32_8 = arith.constant 0 : i32
    %9 = arith.cmpi eq, %arg1, %c0_i32_8 : i32
    %10 = arith.extui %9 : i1 to i32
    %c0_i32_9 = arith.constant 0 : i32
    %11 = arith.cmpi ne, %10, %c0_i32_9 : i32
    scf.if %11 {
      %c0_10 = arith.constant 0 : index
      %c0_11 = arith.constant 0 : index
      %12 = vector.load %arg7[%c0_10, %c0_11] : memref<8x128xf32, #tpu.memory_space<vmem>>, vector<8x128xf32>
      %cst_12 = arith.constant dense<0.000000e+00> : vector<128xf32>
      %13 = vector.multi_reduction <add>, %12, %cst_12 [0] : vector<8x128xf32> to vector<128xf32>
      %14 = vector.shape_cast %13 : vector<128xf32> to vector<1x128xf32>
      %cst_13 = arith.constant 1.250000e-01 : f32
      %15 = vector.broadcast %cst_13 : f32 to vector<1x128xf32>
      %16 = arith.mulf %14, %15 : vector<1x128xf32>
      %17 = tpu.iota {dimensions = array<i32: 0>} : vector<8x1xi32>
      %c8_i32 = arith.constant 8 : i32
      %18 = vector.broadcast %c8_i32 : i32 to vector<8x1xi32>
      %19 = arith.cmpi slt, %17, %18 : vector<8x1xi32>
      %20 = vector.broadcast %16 : vector<1x128xf32> to vector<8x128xf32>
      %21 = arith.subf %12, %20 : vector<8x128xf32>
      %cst_14 = arith.constant 0.000000e+00 : f32
      %22 = vector.shape_cast %19 : vector<8x1xi1> to vector<8x1xi1>
      %23 = vector.broadcast %22 : vector<8x1xi1> to vector<8x128xi1>
      %24 = vector.broadcast %cst_14 : f32 to vector<8x128xf32>
      %25 = arith.select %23, %21, %24 : vector<8x128xi1>, vector<8x128xf32>
      %26 = arith.mulf %25, %25 : vector<8x128xf32>
      %cst_15 = arith.constant dense<0.000000e+00> : vector<128xf32>
      %27 = vector.multi_reduction <add>, %26, %cst_15 [0] : vector<8x128xf32> to vector<128xf32>
      %28 = vector.shape_cast %27 : vector<128xf32> to vector<1x128xf32>
      %cst_16 = arith.constant 1.250000e-01 : f32
      %29 = vector.broadcast %cst_16 : f32 to vector<1x128xf32>
      %30 = arith.mulf %28, %29 : vector<1x128xf32>
      %cst_17 = arith.constant 1.000000e-03 : f32
      %31 = vector.broadcast %cst_17 : f32 to vector<1x128xf32>
      %32 = arith.addf %30, %31 : vector<1x128xf32>
      %33 = math.rsqrt %32 : vector<1x128xf32>
      %c0_18 = arith.constant 0 : index
      %c0_19 = arith.constant 0 : index
      %34 = vector.load %arg4[%c0_18, %c0_19] : memref<1x128xf32, #tpu.memory_space<vmem>>, vector<1x128xf32>
      %35 = arith.mulf %34, %33 : vector<1x128xf32>
      %c0_20 = arith.constant 0 : index
      %c0_21 = arith.constant 0 : index
      %36 = vector.load %arg5[%c0_20, %c0_21] : memref<1x128xf32, #tpu.memory_space<vmem>>, vector<1x128xf32>
      %37 = arith.mulf %16, %35 : vector<1x128xf32>
      %38 = arith.subf %36, %37 : vector<1x128xf32>
      %39 = vector.broadcast %35 : vector<1x128xf32> to vector<8x128xf32>
      %40 = arith.mulf %12, %39 : vector<8x128xf32>
      %41 = vector.broadcast %38 : vector<1x128xf32> to vector<8x128xf32>
      %42 = arith.addf %40, %41 : vector<8x128xf32>
      %43 = math.tanh %42 : vector<8x128xf32>
      %c0_22 = arith.constant 0 : index
      %c0_23 = arith.constant 0 : index
      %44 = vector.load %arg6[%c0_22, %c0_23] : memref<8x128xf32, #tpu.memory_space<vmem>>, vector<8x128xf32>
      tpu.vector_store %arg6[%c0_22, %c0_23], %43 {strides = array<i32>} : memref<8x128xf32, #tpu.memory_space<vmem>>, vector<8x128xf32>,
    } else {
    }
    return
  }
  func.func @transform_0(%arg0: i32, %arg1: i32) -> (i32, i32) {
    %c0_i32 = arith.constant 0 : i32
    %c0_i32_0 = arith.constant 0 : i32
    return %c0_i32, %arg1 : i32, i32
  }
  func.func @transform_1(%arg0: i32, %arg1: i32) -> (i32, i32) {
    %c0_i32 = arith.constant 0 : i32
    return %arg0, %arg1 : i32, i32
  }
  func.func @transform_2(%arg0: i32, %arg1: i32) -> (i32, i32) {
    %c0_i32 = arith.constant 0 : i32
    %c0_i32_0 = arith.constant 0 : i32
    return %c0_i32, %arg0 : i32, i32
  }
  func.func @transform_3(%arg0: i32, %arg1: i32) -> (i32, i32) {
    %c0_i32 = arith.constant 0 : i32
    %c0_i32_0 = arith.constant 0 : i32
    return %c0_i32, %arg0 : i32, i32
  }
  func.func @transform_4(%arg0: i32, %arg1: i32) -> (i32, i32) {
    %c0_i32 = arith.constant 0 : i32
    %c0_i32_0 = arith.constant 0 : i32
    return %c0_i32, %arg0 : i32, i32
  }
}

</mosaic_0001>

<bundles_post_ra>
// kernel: _tanh_block_impl.1
= control target key start
LH: loop header
LB: loop body
LE: loop exit
PB: predicated region body
PF: predicated region fallthrough
CT: control target
= control target key end

     0   :  { %v1244_v2 = vmov 0.0|0.0   ;;  %vm1245_vm0 = vmmov 0   ;;  %v1246_v7 = vmov 0.0   ;;  %s1557_s0 = inlined_call_operand.vmem [shape: f32[8,128], index: 0, kind: input, shape index: {}]   ;;  %s1558_s1 = inlined_call_operand.vmem [shape: f32[128,128], index: 1, kind: input, shape index: {}]   ;;  %s1559_s2 = inlined_call_operand.vmem [shape: f32[1,128], index: 2, kind: input, shape index: {}]   ;;  %s1560_s3 = inlined_call_operand.vmem [shape: f32[1,128], index: 3, kind: input, shape index: {}]   ;;  %s1561_s4 = inlined_call_operand.hbm [shape: f32[8,128], index: 4, kind: output, shape index: {}]  }
   0x1   :  { %v25_v0 = vld [vmem:[%s1558_s1] sm:$0xff]  ;;  %v26_v1 = vld [vmem:[%s1558_s1 + $0x8] sm:$0xff]  ;;  %1059 = vmatprep.subr.bf16.mxu1 %v1244_v2  ;;  %1131 = vmatprep.subr.bf16.mxu0 %v1244_v2  ;;  %v27_v5 = vld [vmem:[%s1558_s1 + $0x10] sm:$0xff] }
   0x2   :  { %v42_v3 = vand.u32 4294901760, %v25_v0  ;;  %v45_v4 = vand.u32 4294901760, %v26_v1  ;;  %v28_v6 = vld [vmem:[%s1558_s1 + $0x18] sm:$0xff]  ;;  %881 = vmatprep.mubr.msk.f32.mxu1 %vm1245_vm0, %v1246_v7  ;;  %986 = vmatprep.mubr.msk.f32.mxu0 %vm1245_vm0, %v1246_v7  ;;  %v48_v9 = vand.u32 4294901760, %v27_v5 }
   0x3   :  { %v51_v10 = vand.u32 4294901760, %v28_v6 }
   0x4   :  { %v1291_v8 = vpack.c.bf16 %v45_v4, %v42_v3 }
   0x6   :  { %1061 = vmatpush3.bf16.xpose.msra.mxu1 %v1291_v8  ;;  %1133 = vmatpush3.bf16.xpose.msra.mxu0 %v1291_v8 }
   0x7   :  { %1062 = vmatprep.subr.bf16.mxu1 %v1244_v2  ;;  %1134 = vmatprep.subr.bf16.mxu0 %v1244_v2 }
   0x8   :  { %9 = vsyncpa [#allocation4], 0  ;;  %v1297_v11 = vpack.c.bf16 %v51_v10, %v48_v9  ;;  %v29_v12 = vld [vmem:[%s1558_s1 + $0x20] sm:$0xff]  ;;  %v30_v13 = vld [vmem:[%s1558_s1 + $0x28] sm:$0xff]  ;;  %v1321_v21 = vsub.f32 %v25_v0, %v42_v3  ;;  %v1323_v22 = vsub.f32 %v26_v1, %v45_v4  ;;  %v1331_v25 = vsub.f32 %v27_v5, %v48_v9  ;;  %s1247_s25 = smov [#allocation3]  }
   0x9   :  { %v54_v14 = vand.u32 4294901760, %v29_v12  ;;  %v57_v15 = vand.u32 4294901760, %v30_v13  ;;  %v31_v17 = vld [vmem:[%s1558_s1 + $0x30] sm:$0xff]  ;;  %v32_v18 = vld [vmem:[%s1558_s1 + $0x38] sm:$0xff]  ;;  %v33_v23 = vld [vmem:[%s1558_s1 + $0x40] sm:$0xff]  ;;  %v1333_v26 = vsub.f32 %v28_v6, %v51_v10  ;;  %s739_s26 = sshll.u32 %s1247_s25, 4  ;;  %s740_s26 = int_to_ptr.vmem [resolvable:$true] %s739_s26 }
   0xa   :  { %v60_v19 = vand.u32 4294901760, %v31_v17  ;;  %v63_v20 = vand.u32 4294901760, %v32_v18  ;;  %v34_v24 = vld [vmem:[%s1558_s1 + $0x48] sm:$0xff]  ;;  %v1108_v30 = vpack.c.bf16 %v1323_v22, %v1321_v21  ;;  %v66_v33 = vand.u32 4294901760, %v33_v23  ;;  %v35_v41 = vld [vmem:[%s1558_s1 + $0x50] sm:$0xff]  ;;  %v36_v42 = vld [vmem:[%s1558_s1 + $0x58] sm:$0xff]  ;;  %p1225_p1 = scmp.lt.s32.totalorder %s740_s26, %s740_s26 }
   0xb   :  { %v1309_v16 = vpack.c.bf16 %v57_v15, %v54_v14  ;;  %v1335_v27 = vsub.f32 %v29_v12, %v54_v14  ;;  %v1337_v28 = vsub.f32 %v30_v13, %v57_v15  ;;  %v69_v34 = vand.u32 4294901760, %v34_v24  ;;  %v37_v49 = vld [vmem:[%s1558_s1 + $0x60] sm:$0xff]  ;;  %v38_v50 = vld [vmem:[%s1558_s1 + $0x68] sm:$0xff]  ;;  %v39_v58 = vld [vmem:[%s1558_s1 + $0x70] sm:$0xff] }
   0xc   :  { %v1339_v29 = vpack.c.bf16 %v63_v20, %v60_v19  ;;  %v1343_v31 = vsub.f32 %v31_v17, %v60_v19  ;;  %v1345_v32 = vsub.f32 %v32_v18, %v63_v20  ;;  %v1111_v35 = vpack.c.bf16 %v1333_v26, %v1331_v25  ;;  %v24_v56 = vld [vmem:[%s1557_s0] sm:$0xff]  ;;  %v40_v59 = vld [vmem:[%s1558_s1 + $0x78] sm:$0xff] }
   0xd   :  { %v1349_v36 = vsub.f32 %v33_v23, %v66_v33  ;;  %v1351_v37 = vsub.f32 %v34_v24, %v69_v34  ;;  %v1114_v38 = vpack.c.bf16 %v1337_v28, %v1335_v27  ;;  %v1369_v43 = vpack.c.bf16 %v69_v34, %v66_v33 }
   0xe   :  { %1064 = vmatpush3.bf16.xpose.msra.mxu1 %v1297_v11  ;;  %1136 = vmatpush3.bf16.xpose.msra.mxu0 %v1297_v11  ;;  %v1117_v39 = vpack.c.bf16 %v1345_v32, %v1343_v31  ;;  %v72_v44 = vand.u32 4294901760, %v35_v41  ;;  %v75_v45 = vand.u32 4294901760, %v36_v42  ;;  %v78_v52 = vand.u32 4294901760, %v37_v49 }
   0xf   :  { %1065 = vmatprep.subr.bf16.mxu1 %v1244_v2  ;;  %1137 = vmatprep.subr.bf16.mxu0 %v1244_v2  ;;  %v1120_v40 = vpack.c.bf16 %v1351_v37, %v1349_v36  ;;  %v81_v53 = vand.u32 4294901760, %v38_v50  ;;  %v1408_v60 = vand.u32 4294901760, %v24_v56  ;;  %v84_v62 = vand.u32 4294901760, %v39_v58 }
  0x10   :  { %v1371_v46 = vsub.f32 %v35_v41, %v72_v44  ;;  %v1373_v47 = vsub.f32 %v36_v42, %v75_v45  ;;  %v1387_v51 = vpack.c.bf16 %v75_v45, %v72_v44  ;;  %v1389_v54 = vsub.f32 %v37_v49, %v78_v52 }
  0x11   :  { %v1391_v55 = vsub.f32 %v38_v50, %v81_v53  ;;  %v1410_v61 = vpack.c.bf16 %v81_v53, %v78_v52  ;;  %v87_v63 = vand.u32 4294901760, %v40_v59  ;;  %v1412_v0 = vsub.f32 %v39_v58, %v84_v62 }
  0x12   :  { %v1123_v48 = vpack.c.bf16 %v1373_v47, %v1371_v46  ;;  %v1417_v3 = vsub.f32 %v24_v56, %v1408_v60  ;;  %v135_v4 = vand.u32 4294901760, %v1321_v21  ;;  %v142_v5 = vand.u32 4294901760, %v1323_v22 }
  0x13   :  { %v1126_v57 = vpack.c.bf16 %v1391_v55, %v1389_v54  ;;  %v1414_v1 = vsub.f32 %v40_v59, %v87_v63  ;;  %v1428_v10 = vpack.c.bf16 %v87_v63, %v84_v62  ;;  %v149_v18 = vand.u32 4294901760, %v1331_v25 }
  0x14   :  { %v124_v9 = vand.u32 4294901760, %v1417_v3  ;;  %v136_v12 = vsub.f32 %v1321_v21, %v135_v4  ;;  %v143_v13 = vsub.f32 %v1323_v22, %v142_v5  ;;  %v156_v19 = vand.u32 4294901760, %v1333_v26 }
  0x15   :  { %v1129_v6 = vpack.c.bf16 %v1414_v1, %v1412_v0  ;;  %v1156_v24 = vpack.c.bf16 %v142_v5, %v135_v4  ;;  %v150_v33 = vsub.f32 %v1331_v25, %v149_v18  ;;  %v163_v44 = vand.u32 4294901760, %v1335_v27 }
  0x16   :  { %1067 = vmatpush3.bf16.xpose.msra.mxu1 %v1309_v16  ;;  %1139 = vmatpush3.bf16.xpose.msra.mxu0 %v1309_v16  ;;  %v125_v14 = vsub.f32 %v1417_v3, %v124_v9  ;;  %v137_v15 = vand.u32 4294901760, %v136_v12  ;;  %v144_v17 = vand.u32 4294901760, %v143_v13  ;;  %v157_v34 = vsub.f32 %v1333_v26, %v156_v19 }
  0x17   :  { %1068 = vmatprep.subr.bf16.mxu1 %v1244_v2  ;;  %1140 = vmatprep.subr.bf16.mxu0 %v1244_v2  ;;  %v151_v41 = vand.u32 4294901760, %v150_v33  ;;  %v170_v45 = vand.u32 4294901760, %v1337_v28  ;;  %v1159_v50 = vpack.c.bf16 %v156_v19, %v149_v18  ;;  %v164_v52 = vsub.f32 %v1335_v27, %v163_v44 }
  0x18   :  { %v126_v20 = vand.u32 4294901760, %v125_v14  ;;  %v1084_v23 = vpack.c.bf16 %v144_v17, %v137_v15  ;;  %v158_v42 = vand.u32 4294901760, %v157_v34  ;;  %v177_v59 = vand.u32 4294901760, %v1343_v31 }
  0x19   :  { %v171_v53 = vsub.f32 %v1337_v28, %v170_v45  ;;  %v165_v56 = vand.u32 4294901760, %v164_v52  ;;  %v184_v62 = vand.u32 4294901760, %v1345_v32  ;;  %v1162_v4 = vpack.c.bf16 %v170_v45, %v163_v44 }
  0x1a   :  { %v1087_v49 = vpack.c.bf16 %v158_v42, %v151_v41  ;;  %v178_v5 = vsub.f32 %v1343_v31, %v177_v59  ;;  %v191_v14 = vand.u32 4294901760, %v1349_v36  ;;  %v198_v15 = vand.u32 4294901760, %v1351_v37 }
  0x1b   :  { %v172_v58 = vand.u32 4294901760, %v171_v53  ;;  %v1165_v18 = vpack.c.bf16 %v184_v62, %v177_v59  ;;  %v205_v33 = vand.u32 4294901760, %v1371_v46  ;;  %v212_v34 = vand.u32 4294901760, %v1373_v47 }
  0x1c   :  { %v179_v12 = vand.u32 4294901760, %v178_v5  ;;  %v192_v19 = vsub.f32 %v1349_v36, %v191_v14  ;;  %v1168_v42 = vpack.c.bf16 %v198_v15, %v191_v14  ;;  %v219_v52 = vand.u32 4294901760, %v1389_v54 }
  0x1d   :  { %v1090_v63 = vpack.c.bf16 %v172_v58, %v165_v56  ;;  %v206_v44 = vsub.f32 %v1371_v46, %v205_v33  ;;  %v213_v45 = vsub.f32 %v1373_v47, %v212_v34  ;;  %v226_v53 = vand.u32 4294901760, %v1391_v55 }
  0x1e   :  { %1070 = vmatpush3.bf16.xpose.msra.mxu1 %v1339_v29  ;;  %1142 = vmatpush3.bf16.xpose.msra.mxu0 %v1339_v29  ;;  %v1171_v58 = vpack.c.bf16 %v212_v34, %v205_v33  ;;  %v220_v59 = vsub.f32 %v1389_v54, %v219_v52  ;;  %v233_v5 = vand.u32 4294901760, %v1412_v0  ;;  %v718_v46 = vlaneseq }
  0x1f   :  { %1071 = vmatprep.subr.bf16.mxu1 %v1244_v2  ;;  %1143 = vmatprep.subr.bf16.mxu0 %v1244_v2 }
  0x20   :  { %v234_v14 = vsub.f32 %v1412_v0, %v233_v5  ;;  %v719_v47 = vshrl.u32 %v718_v46, 7 }
  0x26   :  { %1073 = vmatpush3.bf16.xpose.msra.mxu1 %v1369_v43  ;;  %1145 = vmatpush3.bf16.xpose.msra.mxu0 %v1369_v43 }
  0x27   :  { %1074 = vmatprep.subr.bf16.mxu1 %v1244_v2  ;;  %1146 = vmatprep.subr.bf16.mxu0 %v1244_v2 }
  0x2e   :  { %1076 = vmatpush3.bf16.xpose.msra.mxu1 %v1387_v51  ;;  %1148 = vmatpush3.bf16.xpose.msra.mxu0 %v1387_v51 }
  0x2f   :  { %1077 = vmatprep.subr.bf16.mxu1 %v1244_v2  ;;  %1149 = vmatprep.subr.bf16.mxu0 %v1244_v2 }
  0x36   :  { %1079 = vmatpush3.bf16.xpose.msra.mxu1 %v1410_v61  ;;  %1151 = vmatpush3.bf16.xpose.msra.mxu0 %v1410_v61 }
  0x37   :  { %1080 = vmatprep.subr.bf16.mxu1 %v1244_v2  ;;  %1152 = vmatprep.subr.bf16.mxu0 %v1244_v2 }
  0x3e   :  { %1082 = vmatpush3.bf16.xpose.msra.mxu1 %v1428_v10  ;;  %1154 = vmatpush3.bf16.xpose.msra.mxu0 %v1428_v10 }
  0x3f   :  { %1083 = vmatprep.subr.bf16.mxu1 %v1244_v2  ;;  %1155 = vmatprep.subr.bf16.mxu0 %v1244_v2 }
  0x45   :  { %882 = vmatmul.mubr.f32.vlgmr.msra.gmra.mrb[0].mxu1 %v126_v20  ;;  %987 = vmatmul.mubr.f32.vlgmr.msra.gmra.mrb[0].mxu0 %v124_v9  ;;  %v185_v9 = vsub.f32 %v1345_v32, %v184_v62  ;;  %v199_v20 = vsub.f32 %v1351_v37, %v198_v15  ;;  %v227_v62 = vsub.f32 %v1391_v55, %v226_v53 }
  0x46   :  { %1085 = vmatpush3.bf16.xpose.msra.mxu1 %v1084_v23  ;;  %1157 = vmatpush3.bf16.xpose.msra.mxu0 %v1156_v24  ;;  %v193_v23 = vand.u32 4294901760, %v192_v19 }
  0x47   :  { %1086 = vmatprep.subr.bf16.mxu1 %v1244_v2  ;;  %1158 = vmatprep.subr.bf16.mxu0 %v1244_v2  ;;  %v186_v13 = vand.u32 4294901760, %v185_v9  ;;  %v200_v24 = vand.u32 4294901760, %v199_v20  ;;  %v240_v9 = vand.u32 4294901760, %v1414_v1 }
  0x48   :  { %916 = vmatprep.mubr.msk.f32.mxu1 %vm1245_vm0, %v1246_v7  ;;  %1021 = vmatprep.mubr.msk.f32.mxu0 %vm1245_vm0, %v1246_v7 }
  0x49   :  { %v1093_v17 = vpack.c.bf16 %v186_v13, %v179_v12  ;;  %v1096_v41 = vpack.c.bf16 %v200_v24, %v193_v23  ;;  %v1174_v13 = vpack.c.bf16 %v226_v53, %v219_v52  ;;  %v241_v15 = vsub.f32 %v1414_v1, %v240_v9 }
  0x4a   :  { %v1177_v20 = vpack.c.bf16 %v240_v9, %v233_v5 }
  0x4e   :  { %1088 = vmatpush3.bf16.xpose.msra.mxu1 %v1087_v49  ;;  %1160 = vmatpush3.bf16.xpose.msra.mxu0 %v1159_v50  ;;  %v207_v49 = vand.u32 4294901760, %v206_v44  ;;  %v214_v50 = vand.u32 4294901760, %v213_v45 }
  0x4f   :  { %1089 = vmatprep.subr.bf16.mxu1 %v1244_v2  ;;  %1161 = vmatprep.subr.bf16.mxu0 %v1244_v2 }
  0x50   :  { %v1099_v56 = vpack.c.bf16 %v214_v50, %v207_v49 }
  0x56   :  { %1091 = vmatpush3.bf16.xpose.msra.mxu1 %v1090_v63  ;;  %1163 = vmatpush3.bf16.xpose.msra.mxu0 %v1162_v4  ;;  %v221_v63 = vand.u32 4294901760, %v220_v59  ;;  %v228_v4 = vand.u32 4294901760, %v227_v62 }
  0x57   :  { %1092 = vmatprep.subr.bf16.mxu1 %v1244_v2  ;;  %1164 = vmatprep.subr.bf16.mxu0 %v1244_v2 }
  0x58   :  { %v1102_v12 = vpack.c.bf16 %v228_v4, %v221_v63 }
  0x5e   :  { %1094 = vmatpush3.bf16.xpose.msra.mxu1 %v1093_v17  ;;  %1166 = vmatpush3.bf16.xpose.msra.mxu0 %v1165_v18  ;;  %v235_v17 = vand.u32 4294901760, %v234_v14  ;;  %v242_v18 = vand.u32 4294901760, %v241_v15 }
  0x5f   :  { %1095 = vmatprep.subr.bf16.mxu1 %v1244_v2  ;;  %1167 = vmatprep.subr.bf16.mxu0 %v1244_v2 }
  0x60   :  { %v1105_v19 = vpack.c.bf16 %v242_v18, %v235_v17 }
  0x66   :  { %1097 = vmatpush3.bf16.xpose.msra.mxu1 %v1096_v41  ;;  %1169 = vmatpush3.bf16.xpose.msra.mxu0 %v1168_v42 }
  0x67   :  { %1098 = vmatprep.subr.bf16.mxu1 %v1244_v2  ;;  %1170 = vmatprep.subr.bf16.mxu0 %v1244_v2 }
  0x6e   :  { %1100 = vmatpush3.bf16.xpose.msra.mxu1 %v1099_v56  ;;  %1172 = vmatpush3.bf16.xpose.msra.mxu0 %v1171_v58 }
  0x6f   :  { %1101 = vmatprep.subr.bf16.mxu1 %v1244_v2  ;;  %1173 = vmatprep.subr.bf16.mxu0 %v1244_v2 }
  0x76   :  { %1103 = vmatpush3.bf16.xpose.msra.mxu1 %v1102_v12  ;;  %1175 = vmatpush3.bf16.xpose.msra.mxu0 %v1174_v13 }
  0x77   :  { %1104 = vmatprep.subr.bf16.mxu1 %v1244_v2  ;;  %1176 = vmatprep.subr.bf16.mxu0 %v1244_v2 }
  0x7e   :  { %1106 = vmatpush3.bf16.xpose.msra.mxu1 %v1105_v19  ;;  %1178 = vmatpush3.bf16.xpose.msra.mxu0 %v1177_v20 }
  0x7f   :  { %1107 = vmatprep.subr.bf16.mxu1 %v1244_v2  ;;  %1179 = vmatprep.subr.bf16.mxu0 %v1244_v2 }
  0x85   :  { %917 = vmatmul.mubr.f32.vlgmr.msra.gmra.mrb[0].mxu1 %v1408_v60  ;;  %1022 = vmatmul.mubr.f32.vlgmr.msra.gmra.mrb[0].mxu0 %v1408_v60 }
  0x86   :  { %1109 = vmatpush3.bf16.xpose.msra.mxu1 %v1108_v30  ;;  %1181 = vmatpush3.bf16.xpose.msra.mxu0 %v1291_v8 }
  0x87   :  { %1110 = vmatprep.subr.bf16.mxu1 %v1244_v2  ;;  %1182 = vmatprep.subr.bf16.mxu0 %v1244_v2 }
  0x88   :  { %951 = vmatprep.mubr.msk.f32.mxu1 %vm1245_vm0, %v1246_v7  ;;  %1056 = vmatprep.mubr.msk.f32.mxu0 %vm1245_vm0, %v1246_v7 }
  0x8e   :  { %1112 = vmatpush3.bf16.xpose.msra.mxu1 %v1111_v35  ;;  %1184 = vmatpush3.bf16.xpose.msra.mxu0 %v1297_v11 }
  0x8f   :  { %1113 = vmatprep.subr.bf16.mxu1 %v1244_v2  ;;  %1185 = vmatprep.subr.bf16.mxu0 %v1244_v2 }
  0x96   :  { %1115 = vmatpush3.bf16.xpose.msra.mxu1 %v1114_v38  ;;  %1187 = vmatpush3.bf16.xpose.msra.mxu0 %v1309_v16 }
  0x97   :  { %1116 = vmatprep.subr.bf16.mxu1 %v1244_v2  ;;  %1188 = vmatprep.subr.bf16.mxu0 %v1244_v2 }
  0x9e   :  { %1118 = vmatpush3.bf16.xpose.msra.mxu1 %v1117_v39  ;;  %1190 = vmatpush3.bf16.xpose.msra.mxu0 %v1339_v29 }
  0x9f   :  { %1119 = vmatprep.subr.bf16.mxu1 %v1244_v2  ;;  %1191 = vmatprep.subr.bf16.mxu0 %v1244_v2 }
  0xa6   :  { %1121 = vmatpush3.bf16.xpose.msra.mxu1 %v1120_v40  ;;  %1193 = vmatpush3.bf16.xpose.msra.mxu0 %v1369_v43 }
  0xa7   :  { %1122 = vmatprep.subr.bf16.mxu1 %v1244_v2  ;;  %1194 = vmatprep.subr.bf16.mxu0 %v1244_v2 }
  0xae   :  { %1124 = vmatpush3.bf16.xpose.msra.mxu1 %v1123_v48  ;;  %1196 = vmatpush3.bf16.xpose.msra.mxu0 %v1387_v51  ;;  %v712_v48 = vld [vmem:[%s1559_s2] sm:$0x1]  ;;  %v720_v51 = vsub.s32 0, %v719_v47  ;;  %s1220_s2 = scalar_lea.vmem %s740_s26, 128 }
  0xaf   :  { %1125 = vmatprep.subr.bf16.mxu1 %v1244_v2  ;;  %1197 = vmatprep.subr.bf16.mxu0 %v1244_v2  ;;  %p1221_p0 = scmp.ne.s32.totalorder %s740_s26, %s1220_s2  ;;  %p1226_p2 = scmp.lt.s32.totalorder %s1220_s2, %s1220_s2 }
  0xb1   :  { %p1227_p3 = por %p1226_p2, %p1225_p1 }
  0xb3   :  { %p1228_p4 = pnand %p1227_p3, %p1221_p0 }
  0xb6   :  { %1127 = vmatpush3.bf16.xpose.msra.mxu1 %v1126_v57  ;;  %1199 = vmatpush3.bf16.xpose.msra.mxu0 %v1410_v61  ;;  %v714_v57 = vld [vmem:[%s1560_s3] sm:$0x1] }
  0xb7   :  { %1128 = vmatprep.subr.bf16.mxu1 %v1244_v2  ;;  %1200 = vmatprep.subr.bf16.mxu0 %v1244_v2 }
  0xbe   :  { %1130 = vmatpush3.bf16.xpose.msra.mxu1 %v1129_v6  ;;  %1202 = vmatpush3.bf16.xpose.msra.mxu0 %v1428_v10 }
  0xc5   :  { %952 = vmatmul.mubr.f32.vlgmr.msra.gmra.mrb[0].mxu1 %v1417_v3  ;;  %1057 = vmatmul.mubr.f32.vlgmr.msra.gmra.mrb[0].mxu0 %v1408_v60 }
 0x198   :  { %v383_v7 = vpop.f32.mrb[0].mxu1  ;;  %v678_v8 = vpop.f32.mrb[0].mxu0 }
 0x199   :  { %v1203_v11 = vadd.f32 %v678_v8, %v383_v7  ;;  %v953_v16 = vpop.f32.mrb[1].mxu1  ;;  %v1058_v21 = vpop.f32.mrb[1].mxu0 }
 0x19b   :  { %v688_v22 = vrot.slane %v1203_v11, 4 }
 0x19d   :  { %v689_v25 = vadd.f32 %v1203_v11, %v688_v22 }
 0x19f   :  { %v690_v26 = vrot.slane %v689_v25, 2 }
 0x1a1   :  { %v691_v27 = vadd.f32 %v690_v26, %v689_v25 }
 0x1a3   :  { %v692_v2 = vrot.slane %v691_v27, 1 }
 0x1a5   :  { %v693_v28 = vadd.f32 %v692_v2, %v691_v27 }
 0x1a7   :  { %v694_v29 = vmul.f32 0.125, %v693_v28 }
 0x1a9   :  { %v698_v30 = vsub.f32 %v1203_v11, %v694_v29 }
 0x1ab   :  { %v702_v31 = vmul.f32 %v698_v30, %v698_v30 }
 0x1ad   :  { %v703_v32 = vrot.slane %v702_v31, 4 }
 0x1af   :  { %v704_v35 = vadd.f32 %v703_v32, %v702_v31 }
 0x1b1   :  { %v705_v36 = vrot.slane %v704_v35, 2 }
 0x1b3   :  { %v706_v37 = vadd.f32 %v705_v36, %v704_v35 }
 0x1b5   :  { %v707_v38 = vrot.slane %v706_v37, 1 }
 0x1b7   :  { %v708_v39 = vadd.f32 %v707_v38, %v706_v37 }
 0x1b9   :  { %v709_v40 = vmul.f32 0.125, %v708_v39 }
 0x1bb   :  { %v710_v43 = vadd.f32 0.001, %v709_v40 }
 0x1bd   :  { %1216 = vrsqrt.f32 %v710_v43 }
 0x1c7   :  { %v1217_v54 = vpop.eup %1216 }
 0x1c8   :  { %v713_v55 = vmul.f32 %v1217_v54, %v712_v48 }
 0x1ca   :  { %v715_v60 = vmul.f32 %v713_v55, %v694_v29  ;;  %v721_v61 = vrot.slane %v713_v55, %v720_v51 }
 0x1cc   :  { %v716_v0 = vsub.f32 %v714_v57, %v715_v60  ;;  %v723_v1 = vmul.f32 %v1203_v11, %v721_v61 }
 0x1ce   :  { %v728_v3 = vrot.slane %v716_v0, %v720_v51 }
 0x1d0   :  { %v730_v6 = vadd.f32 %v728_v3, %v723_v1 }
 0x1d2   :  { %1218 = vtanh.f32 %v730_v6 }
 0x1dc   :  { %v1219_v10 = vpop.eup %1218 }
 0x1dd   :  { %732 = vst [vmem:[#allocation3] sm:$0xff] %v1219_v10 }
 0x1de   :  { %1231 = shalt.err (!%p1228_p4)
}
 0x1df   :  { %s1232_s28 = scalar_lea.hbm %s1561_s4, 128 }
 0x1e0   :  { %p1233_p5 = scmp.ne.s32.totalorder %s1561_s4, %s1232_s28  ;;  %p1236_p6 = scmp.lt.u32.totalorder %s1232_s28, %s1561_s4 }
 0x1e2   :  { %p1238_p7 = pnand %p1236_p6, %p1233_p5 }
 0x1e4   :  { %1241 = shalt.err (!%p1238_p7)
}
 0x1e5   :  { %742 = dma.vmem_to_hbm [thread:$0]  %s740_s26, 128, %s1561_s4, [#allocation4]  }
 0x1e6   :  { %1242 = dma.done.wait [#allocation4], 128  }
 0x1e7   :  { %1243 = vsyncadd [#allocation4], 4294967168 }
 0x1e8   :  { %746 = vsyncpa [#allocation4], 1 }

</bundles_post_ra>
